<compile_context>
chip_gen: v5e
topology: v5e:2x2
jax: 0.10.0
libtpu: 0.0.40
codegen_flags: <defaults>
</compile_context>

<pallas_src>
import functools

import jax
import jax.numpy as jnp
from jax import lax
from jax.experimental import pallas as pl
from jax.experimental.pallas import tpu as pltpu


def symmetric_kernel(x_ref, wphi_ref, w1_ref, w2_ref, out_ref, *, squared, inv_s):
    # x_ref:    (TB, S, D_in)     batch tile
    # wphi_ref: (D_in, H_phi)     phi.fc.weight^T
    # w1_ref:   (H_phi, H_rho)    rho.fc1.weight^T
    # w2_ref:   (O, H_rho)        rho.fc2.weight (PyTorch layout)
    # out_ref:  (O, TB)           lane-dense (batch on lane axis)
    TB, S, D_in = x_ref.shape

    # phi: single 2D matmul over all (batch * set) rows, relu (+ optional square).
    x2d = x_ref[...].reshape(TB * S, D_in)  # D_in stays last -> cheap fold
    z = jnp.dot(x2d, wphi_ref[...], preferred_element_type=jnp.float32)
    z = jnp.maximum(z, 0.0)
    if squared:
        z = z * z

    # permutation-invariant pooling: mean over the set axis (sum * 1/S).
    z_mean = jnp.sum(z.reshape(TB, S, -1), axis=1) * inv_s  # (TB, H_phi)

    # rho: two-layer MLP (no bias), relu in between.
    h = jnp.dot(z_mean, w1_ref[...], preferred_element_type=jnp.float32)
    h = jnp.maximum(h, 0.0)

    # Final layer computed directly in transposed (O, TB) form so the store is
    # lane-dense on the batch axis: out_t[o, b] = sum_r w2[o, r] * h[b, r].
    out_t = lax.dot_general(
        w2_ref[...], h,
        dimension_numbers=(((1,), (1,)), ((), ())),
        preferred_element_type=jnp.float32,
    )  # (O, TB)
    out_ref[...] = out_t.astype(out_ref.dtype)


def _pick_batch_tile(B, S):
    """Choose a batch tile. If B is small / not 128-aligned, use the full batch
    (lane-axis block constraint for the (O, TB) output requires TB == B or
    TB % 128 == 0). For large aligned batches, target ~1024 sublane rows."""
    if B % 128 != 0:
        return B
    target_rows = 1024
    tb = max(128, min(B, ((target_rows // max(S, 1)) // 128) * 128))
    tb = max(tb, 128)
    while tb > 128 and B % tb != 0:
        tb -= 128
    return tb if B % tb == 0 else B


def symmetric_forward(x, w_phi, w1, w2, *, squared=False):
    """x: (B, S, D_in); w_phi: (H_phi, D_in); w1: (H_rho, H_phi); w2: (O, H_rho).

    Weights are in PyTorch nn.Linear layout (out, in); phi/fc1 are transposed
    in the (plain-JAX) wrapper so the kernel only does right-multiplies, and
    fc2 is kept as (O, H_rho) because the kernel computes the transposed
    (lane-dense) output directly.
    """
    B, S, D_in = x.shape
    H_phi = w_phi.shape[0]
    H_rho = w1.shape[0]
    O = w2.shape[0]

    w_phi_t = jnp.asarray(w_phi).T  # (D_in, H_phi)
    w1_t = jnp.asarray(w1).T        # (H_phi, H_rho)
    w2 = jnp.asarray(w2)            # (O, H_rho)

    TB = _pick_batch_tile(B, S)
    num_tiles = pl.cdiv(B, TB)

    kernel = functools.partial(
        symmetric_kernel, squared=squared, inv_s=1.0 / float(S)
    )

    out_t = pl.pallas_call(
        kernel,
        out_shape=jax.ShapeDtypeStruct((O, B), jnp.float32),
        grid=(num_tiles,),
        in_specs=[
            # x tiles stream over the batch axis (pipelined / double-buffered).
            pl.BlockSpec((TB, S, D_in), lambda i: (i, 0, 0)),
            # Weights stay VMEM-resident across the whole grid.
            pl.BlockSpec((D_in, H_phi), lambda i: (0, 0)),
            pl.BlockSpec((H_phi, H_rho), lambda i: (0, 0)),
            pl.BlockSpec((O, H_rho), lambda i: (0, 0)),
        ],
        # Lane-dense output: batch on the lane axis.
        out_specs=pl.BlockSpec((O, TB), lambda i: (0, i)),
        compiler_params=pltpu.CompilerParams(
            dimension_semantics=("parallel",),
        ),
    )(x, w_phi_t, w1_t, w2)

    return out_t.T  # (B, O)


def symmetric_ref(x, w_phi, w1, w2, *, squared=False):
    """Pure-JAX reference mirroring the PyTorch forward exactly."""
    B, S, D = x.shape
    xf = x.reshape(-1, D)
    z = jnp.maximum(xf @ w_phi.T, 0.0)
    if squared:
        z = z * z
    z = z.reshape(B, S, -1).mean(axis=1)
    h = jnp.maximum(z @ w1.T, 0.0)
    return h @ w2.T


if __name__ == "__main__":
    # Module hyperparameters (input_dim arg = 3 -> effective input_dim = 4)
    input_dim_arg = 3
    D_in = input_dim_arg + 1
    H_phi = 32
    H_rho = 16
    O = 1
    squared = False

    B, S = 2, 8  # batch, set size

    key = jax.random.PRNGKey(0)
    kx, kp, k1, k2 = jax.random.split(key, 4)

    x = jax.random.normal(kx, (B, S, D_in), dtype=jnp.float32)

    # Deterministic parameter init (PyTorch nn.Linear layout: (out, in)),
    # uniform(-1/sqrt(fan_in), 1/sqrt(fan_in)) like torch's default.
    def linear_init(k, out_f, in_f):
        bound = 1.0 / jnp.sqrt(jnp.float32(in_f))
        return jax.random.uniform(
            k, (out_f, in_f), dtype=jnp.float32, minval=-bound, maxval=bound
        )

    w_phi = linear_init(kp, H_phi, D_in)   # phi.fc.weight
    w1 = linear_init(k1, H_rho, H_phi)     # rho.fc1.weight
    w2 = linear_init(k2, O, H_rho)         # rho.fc2.weight

    out = symmetric_forward(x, w_phi, w1, w2, squared=squared)
    out = jax.block_until_ready(out)

    ref = symmetric_ref(x, w_phi, w1, w2, squared=squared)
    assert out.shape == (B, O), out.shape
    assert jnp.allclose(out, ref, atol=1e-5, rtol=1e-5), (out, ref)

    print("KERNEL_OK")
</pallas_src>

<mosaic_0001>
module attributes {stable_mosaic.version = 11 : i64} {
  func.func @symmetric_kernel(%arg0: i32, %arg1: memref<2x8x4xf32, #tpu.memory_space<vmem>>, %arg2: memref<4x32xf32, #tpu.memory_space<vmem>>, %arg3: memref<32x16xf32, #tpu.memory_space<vmem>>, %arg4: memref<1x16xf32, #tpu.memory_space<vmem>>, %arg5: memref<1x2xf32, #tpu.memory_space<vmem>>) attributes {dimension_semantics = [#tpu.dimension_semantics<parallel>], iteration_bounds = array<i64: 1>, scalar_prefetch = 0 : i64, scratch_operands = 0 : i64, tpu.core_type = #tpu.core_type<tc>, window_params = [{transform_indices = @transform_0, window_bounds = array<i64: 2, 8, 4>}, {pipeline_mode = #tpu.pipeline_mode<synchronous>, transform_indices = @transform_1, window_bounds = array<i64: 4, 32>}, {pipeline_mode = #tpu.pipeline_mode<synchronous>, transform_indices = @transform_2, window_bounds = array<i64: 32, 16>}, {pipeline_mode = #tpu.pipeline_mode<synchronous>, transform_indices = @transform_3, window_bounds = array<i64: 1, 16>}, {transform_indices = @transform_4, window_bounds = array<i64: 1, 2>}]} {
    %c0 = arith.constant 0 : index
    %c0_0 = arith.constant 0 : index
    %c0_1 = arith.constant 0 : index
    %0 = vector.load %arg1[%c0, %c0_0, %c0_1] : memref<2x8x4xf32, #tpu.memory_space<vmem>>, vector<2x8x4xf32>
    %1 = vector.shape_cast %0 : vector<2x8x4xf32> to vector<16x4xf32>
    %c0_2 = arith.constant 0 : index
    %c0_3 = arith.constant 0 : index
    %2 = vector.load %arg2[%c0_2, %c0_3] : memref<4x32xf32, #tpu.memory_space<vmem>>, vector<4x32xf32>
    %cst = arith.constant dense<0.000000e+00> : vector<16x32xf32>
    %3 = tpu.matmul %1, %2, %cst {dimension_numbers = #tpu.dot_dimension_numbers<[1], [0], [0], [1], [0, 0, 1, 1], [], []>} : vector<16x4xf32>, vector<4x32xf32>, vector<16x32xf32> -> vector<16x32xf32>
    %cst_4 = arith.constant 0.000000e+00 : f32
    %4 = vector.broadcast %cst_4 : f32 to vector<16x32xf32>
    %5 = arith.maximumf %3, %4 : vector<16x32xf32>
    %6 = vector.shape_cast %5 : vector<16x32xf32> to vector<2x8x32xf32>
    %cst_5 = arith.constant dense<0.000000e+00> : vector<2x32xf32>
    %7 = vector.multi_reduction <add>, %6, %cst_5 [1] : vector<2x8x32xf32> to vector<2x32xf32>
    %cst_6 = arith.constant 1.250000e-01 : f32
    %8 = vector.broadcast %cst_6 : f32 to vector<2x32xf32>
    %9 = arith.mulf %7, %8 : vector<2x32xf32>
    %c0_7 = arith.constant 0 : index
    %c0_8 = arith.constant 0 : index
    %10 = vector.load %arg3[%c0_7, %c0_8] : memref<32x16xf32, #tpu.memory_space<vmem>>, vector<32x16xf32>
    %cst_9 = arith.constant dense<0.000000e+00> : vector<2x16xf32>
    %11 = tpu.matmul %9, %10, %cst_9 {dimension_numbers = #tpu.dot_dimension_numbers<[1], [0], [0], [1], [0, 0, 1, 1], [], []>} : vector<2x32xf32>, vector<32x16xf32>, vector<2x16xf32> -> vector<2x16xf32>
    %cst_10 = arith.constant 0.000000e+00 : f32
    %12 = vector.broadcast %cst_10 : f32 to vector<2x16xf32>
    %13 = arith.maximumf %11, %12 : vector<2x16xf32>
    %c0_11 = arith.constant 0 : index
    %c0_12 = arith.constant 0 : index
    %14 = vector.load %arg4[%c0_11, %c0_12] : memref<1x16xf32, #tpu.memory_space<vmem>>, vector<1x16xf32>
    %cst_13 = arith.constant dense<0.000000e+00> : vector<1x2xf32>
    %15 = tpu.matmul %14, %13, %cst_13 {dimension_numbers = #tpu.dot_dimension_numbers<[1], [1], [0], [0], [0, 0, 1, 0], [], []>} : vector<1x16xf32>, vector<2x16xf32>, vector<1x2xf32> -> vector<1x2xf32>
    %c0_14 = arith.constant 0 : index
    %c0_15 = arith.constant 0 : index
    %16 = vector.load %arg5[%c0_14, %c0_15] : memref<1x2xf32, #tpu.memory_space<vmem>>, vector<1x2xf32>
    tpu.vector_store %arg5[%c0_14, %c0_15], %15 {strides = array<i32>} : memref<1x2xf32, #tpu.memory_space<vmem>>, vector<1x2xf32>,
    return
  }
  func.func @transform_0(%arg0: i32) -> (i32, i32, i32) {
    %c0_i32 = arith.constant 0 : i32
    %c0_i32_0 = arith.constant 0 : i32
    %c0_i32_1 = arith.constant 0 : i32
    return %arg0, %c0_i32, %c0_i32_0 : i32, i32, i32
  }
  func.func @transform_1(%arg0: i32) -> (i32, i32) {
    %c0_i32 = arith.constant 0 : i32
    %c0_i32_0 = arith.constant 0 : i32
    %c0_i32_1 = arith.constant 0 : i32
    return %c0_i32, %c0_i32_0 : i32, i32
  }
  func.func @transform_2(%arg0: i32) -> (i32, i32) {
    %c0_i32 = arith.constant 0 : i32
    %c0_i32_0 = arith.constant 0 : i32
    %c0_i32_1 = arith.constant 0 : i32
    return %c0_i32, %c0_i32_0 : i32, i32
  }
  func.func @transform_3(%arg0: i32) -> (i32, i32) {
    %c0_i32 = arith.constant 0 : i32
    %c0_i32_0 = arith.constant 0 : i32
    %c0_i32_1 = arith.constant 0 : i32
    return %c0_i32, %c0_i32_0 : i32, i32
  }
  func.func @transform_4(%arg0: i32) -> (i32, i32) {
    %c0_i32 = arith.constant 0 : i32
    %c0_i32_0 = arith.constant 0 : i32
    return %c0_i32, %arg0 : i32, i32
  }
}

</mosaic_0001>

<bundles_post_ra>
// kernel: tpu_custom_call.1
= control target key start
LH: loop header
LB: loop body
LE: loop exit
PB: predicated region body
PF: predicated region fallthrough
CT: control target
= control target key end

     0   :  { %vm28_vm0 = vcmask 1043456   ;;  %vm21_vm1 = vcmask 31744   ;;  %s241_s0 = inlined_call_operand.vmem [shape: f32[2,8,4], index: 0, kind: input, shape index: {}]   ;;  %s242_s1 = inlined_call_operand.vmem [shape: f32[4,32], index: 1, kind: input, shape index: {}]   ;;  %s243_s2 = inlined_call_operand.vmem [shape: f32[32,16], index: 2, kind: input, shape index: {}]   ;;  %s244_s3 = inlined_call_operand.vmem [shape: f32[1,16], index: 3, kind: input, shape index: {}]   ;;  %s245_s4 = inlined_call_operand.hbm [shape: f32[1,2], index: 4, kind: output, shape index: {}]  }
   0x1   :  { %v20_v0 = vld [vmem:[%s242_s1] sm:$0xf]  ;;  %v19_v2 = vld [vmem:[%s241_s0 + $0x8] sm:$0xff] }
   0x2   :  { %v18_v1 = vld [vmem:[%s241_s0] sm:$0xff]  ;;  %151 = vmatpush.msk.msra.mxu0 %vm28_vm0, %v20_v0  ;;  %157 = vmatpush.msk.msra.mxu3 %vm28_vm0, %v20_v0 }
   0x3   :  { %9 = vsyncpa [#allocation3], 0  ;;  %152 = vmatmul.msk.f32.vlgmr.msra.gmra.mxu0 %vm21_vm1, %v18_v1  ;;  %153 = vmatmul.msk.f32.vlgmr.msra.gmra.mxu3 %vm21_vm1, %v19_v2  ;;  %v77_v3 = vld [vmem:[%s243_s2 + $0x18] sm:$0xff]  ;;  %v76_v4 = vld [vmem:[%s243_s2 + $0x10] sm:$0xff]  ;;  %vm57_vm2 = vcmask 261120   ;;  %vm80_vm3 = vcmask 1041409  }
   0x4   :  { %96 = vmatpush.msra.mxu1 %v77_v3  ;;  %v75_v5 = vld [vmem:[%s243_s2 + $0x8] sm:$0xff]  ;;  %v74_v6 = vld [vmem:[%s243_s2] sm:$0xff]  ;;  %vm106_vm4 = vcmask 130048   ;;  %s185_s28 = smov [#allocation2]   ;;  %s142_s6 = sshll.u32 %s245_s4, 4  ;;  %vm133_vm5 = vcmask 8192   ;;  %s143_s6 = int_to_ptr.hbm [resolvable:$true] %s142_s6 }
   0x5   :  { %v105_v30 = vld [vmem:[%s244_s3] sm:$0x1]  ;;  %s140_s29 = sshll.u32 %s185_s28, 4  ;;  %s141_s29 = int_to_ptr.vmem [resolvable:$true] %s140_s29 }
   0x6   :  { %97 = vmatpush.msra.mxu1 %v76_v4 }
   0x8   :  { %98 = vmatpush.msra.mxu1 %v75_v5 }
   0xa   :  { %99 = vmatpush.msra.mxu1 %v74_v6 }
  0x80   :  { %v49_v7 = vpop.f32.mrf.mxu0 }
  0x81   :  { %v55_v8 = vmax.f32 %v49_v7, 0.0 }
  0x83   :  { %v58_v9 = vsel %vm57_vm2, %v55_v8, 0.0 }
  0x84   :  { %v59_v10 = vrot.slane %v58_v9, 4 }
  0x86   :  { %v60_v11 = vadd.f32 %v59_v10, %v58_v9  ;;  %v52_v12 = vpop.f32.mrf.mxu3 }
  0x87   :  { %v56_v13 = vmax.f32 %v52_v12, 0.0 }
  0x88   :  { %v61_v14 = vrot.slane %v60_v11, 2 }
  0x89   :  { %v65_v15 = vsel %vm57_vm2, %v56_v13, 0.0 }
  0x8a   :  { %v62_v16 = vadd.f32 %v61_v14, %v60_v11  ;;  %v66_v17 = vrot.slane %v65_v15, 4 }
  0x8c   :  { %v67_v18 = vadd.f32 %v66_v17, %v65_v15  ;;  %v63_v19 = vrot.slane %v62_v16, 1 }
  0x8e   :  { %v68_v20 = vrot.slane %v67_v18, 2  ;;  %v64_v23 = vadd.f32 %v63_v19, %v62_v16 }
  0x90   :  { %v69_v21 = vadd.f32 %v68_v20, %v67_v18  ;;  %v72_v25 = vmul.f32 0.125, %v64_v23 }
  0x92   :  { %v70_v22 = vrot.slane %v69_v21, 1 }
  0x94   :  { %v71_v24 = vadd.f32 %v70_v22, %v69_v21 }
  0x96   :  { %v73_v26 = vmul.f32 0.125, %v71_v24 }
  0x98   :  { %v81_v27 = vsel %vm80_vm3, %v73_v26, %v72_v25 }
  0x99   :  { %154 = vmatmul.msk.f32.vlgmr.msra.gmra.mxu1 %vm57_vm2, %v81_v27 }
 0x116   :  { %v101_v28 = vpop.f32.mrf.mxu1 }
 0x117   :  { %v104_v29 = vmax.f32 %v101_v28, 0.0 }
 0x119   :  { %155 = vmatpush.xpose.msk.msra.mxu2 %vm106_vm4, %v104_v29 }
 0x11c   :  { %156 = vmatmul.msk.f32.vlgmr.msra.gmra.mxu2 %vm106_vm4, %v105_v30 }
 0x19f   :  { %v130_v31 = vpop.f32.mrf.mxu2 }
 0x1a0   :  { %134 = vst.msk [vmem:[#allocation2] sm:$0x1] %vm133_vm5, %v130_v31 }
 0x1a1   :  { %145 = dma.vmem_to_hbm [thread:$0]  %s141_s29, 16, %s143_s6, [#allocation3]  }
 0x1a2   :  { %183 = dma.done.wait [#allocation3], 16  }
 0x1a3   :  { %184 = vsyncadd [#allocation3], 4294967280 }
 0x1a4   :  { %150 = vsyncpa [#allocation3], 1 }

</bundles_post_ra>
